<compile_context>
chip_gen: v6e
topology: v6e:2x2x1
jax: 0.10.0
libtpu: 0.0.40
codegen_flags: <defaults>
</compile_context>

<pallas_src>
import numpy as np

import jax
import jax.numpy as jnp
from jax.experimental import pallas as pl
from jax.experimental.pallas import tpu as pltpu


def dct_mat(size):
    # identical to the PyTorch DCT_mat helper
    return [[(np.sqrt(1.0 / size) if i == 0 else np.sqrt(2.0 / size))
             * np.cos((j + 0.5) * np.pi * i / size)
             for j in range(size)] for i in range(size)]


def generate_filter(start, end, size):
    # identical to the PyTorch helper
    return [[0.0 if i + j > end or i + j < start else 1.0 for j in range(size)]
            for i in range(size)]


def _fad_head_kernel(x_ref, a_ref, o_ref):
    # x_ref: (tb, C, S)      f32 input planes (flattened H*W, lane-dense)
    # a_ref: (S, 4*S)        bf16 folded operator  [K^T diag(f_i) K]_i
    # o_ref: (tb, 4, C, S)   output already in the final (B, 4, C, H*W) layout
    s = a_ref.shape[0]
    n_f = o_ref.shape[1]
    tb = x_ref.shape[0]
    a = a_ref[...]                                     # load operator once per step
    for b in range(tb):                                # small static unroll (tb <= 8)
        xb = x_ref[b].astype(jnp.bfloat16)             # (C, S) -> full MXU rate
        y = jnp.dot(xb, a, preferred_element_type=jnp.float32)   # (C, 4*S)
        for i in range(n_f):                           # lane-aligned 256-wide stores
            o_ref[b, i, :, :] = y[:, i * s:(i + 1) * s].astype(o_ref.dtype)


def fold_operator(dct, base, learnable):
    """Precompute A = [K^T diag(f_i) K | ...], shape (S, 4*S), bf16."""
    n_f = base.shape[0]
    s = dct.shape[0] * dct.shape[1]
    # filt_i = base_i + 2*sigmoid(learnable_i) - 1, flattened row-major like x.
    filt = (base + (2.0 * jax.nn.sigmoid(learnable) - 1.0)).reshape(n_f, s)
    k = jnp.kron(dct, dct)            # row-vec: xf = x @ K^T ; y = (xf * f) @ K
    hi = jax.lax.Precision.HIGHEST    # keep the f32 precompute exact-ish
    a_bands = [jnp.dot(k.T, filt[i][:, None] * k, precision=hi)
               for i in range(n_f)]
    return jnp.concatenate(a_bands, axis=1).astype(jnp.bfloat16)


@jax.jit
def fad_head_forward(x, dct, base, learnable):
    """x: (B, C, H, W); dct: (H, H); base/learnable: (4, H, W)."""
    B, C, H, W = x.shape
    S = H * W
    n_f = base.shape[0]

    # Parameter-only work, hoisted out of the kernel.
    a = fold_operator(dct, base, learnable)            # (S, 4*S) bf16
    x3 = x.reshape(B, C, S)                            # free view, lane-dense planes

    # Batch-tile size: divisor of B (no padding), >= 2 grid steps when B >= 2
    # (so v7x's two TensorCores both get work), capped so the static unroll and
    # the double-buffered output tile stay small (far inside 16 MiB on v5e).
    max_rows = 1024
    tb = max(1, min(B, max_rows // max(C, 1)))
    if B >= 2:
        tb = min(tb, (B + 1) // 2)
    tb = min(tb, 8)
    while B % tb:
        tb -= 1

    grid_spec = pltpu.PrefetchScalarGridSpec(
        num_scalar_prefetch=0,
        grid=(B // tb,),
        in_specs=[
            pl.BlockSpec((tb, C, S), lambda i: (i, 0, 0)),       # x batch tile
            pl.BlockSpec((S, n_f * S), lambda i: (0, 0)),        # folded operator
        ],
        out_specs=pl.BlockSpec((tb, n_f, C, S), lambda i: (i, 0, 0, 0)),
    )

    out = pl.pallas_call(
        _fad_head_kernel,
        out_shape=jax.ShapeDtypeStruct((B, n_f, C, S), x.dtype),
        grid_spec=grid_spec,
        compiler_params=pltpu.CompilerParams(
            dimension_semantics=("parallel",),          # shard batch tiles across TCs
            vmem_limit_bytes=32 * 1024 * 1024),         # headroom over v5e's default
    )(x3, a)

    # (B, 4, C, S) -> (B, 4*C, H, W): pure view, no transpose, no data movement.
    return out.reshape(B, n_f * C, H, W)


if __name__ == "__main__":
    size = 16
    B, C = 2, 4

    key = jax.random.PRNGKey(0)
    k_x, k0, k1, k2, k3 = jax.random.split(key, 5)

    # DCT matrix, cast to float32 exactly like the PyTorch module.
    d = np.asarray(dct_mat(size), dtype=np.float64).astype(np.float32)

    # Filter bands exactly as in FAD_Head.__init__ (note: 16 // 2.82 == 5.0).
    bands = [(0, size // 2.82), (size // 2.82, size // 2),
             (size // 2, size * 2), (0, size * 2)]
    base = np.stack([np.asarray(generate_filter(s, e, size), dtype=np.float32)
                     for s, e in bands])                           # (4, 16, 16)

    # learnable.data.normal_(0.0, 0.1) for each of the 4 filters.
    learnable = jnp.stack([0.1 * jax.random.normal(k, (size, size), jnp.float32)
                           for k in (k0, k1, k2, k3)])             # (4, 16, 16)

    x = jax.random.normal(k_x, (B, C, size, size), dtype=jnp.float32)

    out = fad_head_forward(x, jnp.asarray(d), jnp.asarray(base), learnable)
    jax.block_until_ready(out)
    got = np.asarray(out, dtype=np.float64)

    # --- Check 1: exact float64 reference of the module forward. Tolerance is
    # sized for the bf16 MXU operands (f32 accumulation). ---
    dn = d.astype(np.float64)
    xn = np.asarray(x, dtype=np.float64)
    ln = np.asarray(learnable, dtype=np.float64)
    fn = base.astype(np.float64) + (2.0 / (1.0 + np.exp(-ln)) - 1.0)
    x_freq = np.einsum('ij,bcjk,lk->bcil', dn, xn, dn)
    ref = np.concatenate(
        [np.einsum('ji,bcjk,kl->bcil', dn, x_freq * fn[i], dn) for i in range(4)],
        axis=1)
    max_err = float(np.max(np.abs(got - ref)))
    assert np.allclose(got, ref, atol=5e-2, rtol=5e-2), max_err

    # --- Check 2 (tight): same math with the kernel's bf16 quantization of x
    # and of the folded operator applied up front; isolates kernel correctness
    # from the intentional bf16 input rounding. ---
    a_q = np.asarray(
        fold_operator(jnp.asarray(d), jnp.asarray(base), learnable)
        .astype(jnp.float32), dtype=np.float64)                    # (S, 4*S)
    x_q = np.asarray(jnp.asarray(x).astype(jnp.bfloat16).astype(jnp.float32),
                     dtype=np.float64).reshape(B * C, size * size)
    y_q = x_q @ a_q                                                # (B*C, 4*S)
    ref_q = (y_q.reshape(B, C, 4, size, size)
                 .transpose(0, 2, 1, 3, 4).reshape(B, 4 * C, size, size))
    max_err_q = float(np.max(np.abs(got - ref_q)))
    assert np.allclose(got, ref_q, atol=2e-3, rtol=2e-3), max_err_q

    print("KERNEL_OK")
</pallas_src>

<mosaic_0001>
module attributes {stable_mosaic.version = 11 : i64} {
  func.func @_fad_head_kernel(%arg0: i32, %arg1: memref<1x4x256xf32, #tpu.memory_space<vmem>>, %arg2: memref<256x1024xbf16, #tpu.memory_space<vmem>>, %arg3: memref<1x4x4x256xf32, #tpu.memory_space<vmem>>) attributes {dimension_semantics = [#tpu.dimension_semantics<parallel>], iteration_bounds = array<i64: 2>, scalar_prefetch = 0 : i64, scratch_operands = 0 : i64, tpu.core_type = #tpu.core_type<tc>, window_params = [{transform_indices = @transform_0, window_bounds = array<i64: 1, 4, 256>}, {pipeline_mode = #tpu.pipeline_mode<synchronous>, transform_indices = @transform_1, window_bounds = array<i64: 256, 1024>}, {transform_indices = @transform_2, window_bounds = array<i64: 1, 4, 4, 256>}]} {
    %c0 = arith.constant 0 : index
    %c0_0 = arith.constant 0 : index
    %0 = vector.load %arg2[%c0, %c0_0] : memref<256x1024xbf16, #tpu.memory_space<vmem>>, vector<256x1024xbf16>
    %c0_1 = arith.constant 0 : index
    %c0_2 = arith.constant 0 : index
    %c0_3 = arith.constant 0 : index
    %1 = vector.load %arg1[%c0_1, %c0_2, %c0_3] : memref<1x4x256xf32, #tpu.memory_space<vmem>>, vector<1x4x256xf32>
    %2 = vector.shape_cast %1 : vector<1x4x256xf32> to vector<4x256xf32>
    %3 = arith.truncf %2 : vector<4x256xf32> to vector<4x256xbf16>
    %cst = arith.constant dense<0.000000e+00> : vector<4x1024xf32>
    %4 = tpu.matmul %3, %0, %cst {dimension_numbers = #tpu.dot_dimension_numbers<[1], [0], [0], [1], [0, 0, 1, 1], [], []>} : vector<4x256xbf16>, vector<256x1024xbf16>, vector<4x1024xf32> -> vector<4x1024xf32>
    %5 = vector.extract_strided_slice %4 {offsets = [0, 0], sizes = [4, 256], strides = [1, 1]} : vector<4x1024xf32> to vector<4x256xf32>
    %c0_4 = arith.constant 0 : index
    %c0_5 = arith.constant 0 : index
    %c0_6 = arith.constant 0 : index
    %c0_7 = arith.constant 0 : index
    %6 = vector.load %arg3[%c0_4, %c0_5, %c0_6, %c0_7] : memref<1x4x4x256xf32, #tpu.memory_space<vmem>>, vector<1x1x4x256xf32>
    %7 = vector.shape_cast %6 : vector<1x1x4x256xf32> to vector<4x256xf32>
    %8 = vector.shape_cast %5 : vector<4x256xf32> to vector<1x1x4x256xf32>
    tpu.vector_store %arg3[%c0_4, %c0_5, %c0_6, %c0_7], %8 {strides = array<i32>} : memref<1x4x4x256xf32, #tpu.memory_space<vmem>>, vector<1x1x4x256xf32>,
    %9 = vector.extract_strided_slice %4 {offsets = [0, 256], sizes = [4, 256], strides = [1, 1]} : vector<4x1024xf32> to vector<4x256xf32>
    %c0_8 = arith.constant 0 : index
    %c1 = arith.constant 1 : index
    %c0_9 = arith.constant 0 : index
    %c0_10 = arith.constant 0 : index
    %10 = vector.load %arg3[%c0_8, %c1, %c0_9, %c0_10] : memref<1x4x4x256xf32, #tpu.memory_space<vmem>>, vector<1x1x4x256xf32>
    %11 = vector.shape_cast %10 : vector<1x1x4x256xf32> to vector<4x256xf32>
    %12 = vector.shape_cast %9 : vector<4x256xf32> to vector<1x1x4x256xf32>
    tpu.vector_store %arg3[%c0_8, %c1, %c0_9, %c0_10], %12 {strides = array<i32>} : memref<1x4x4x256xf32, #tpu.memory_space<vmem>>, vector<1x1x4x256xf32>,
    %13 = vector.extract_strided_slice %4 {offsets = [0, 512], sizes = [4, 256], strides = [1, 1]} : vector<4x1024xf32> to vector<4x256xf32>
    %c0_11 = arith.constant 0 : index
    %c2 = arith.constant 2 : index
    %c0_12 = arith.constant 0 : index
    %c0_13 = arith.constant 0 : index
    %14 = vector.load %arg3[%c0_11, %c2, %c0_12, %c0_13] : memref<1x4x4x256xf32, #tpu.memory_space<vmem>>, vector<1x1x4x256xf32>
    %15 = vector.shape_cast %14 : vector<1x1x4x256xf32> to vector<4x256xf32>
    %16 = vector.shape_cast %13 : vector<4x256xf32> to vector<1x1x4x256xf32>
    tpu.vector_store %arg3[%c0_11, %c2, %c0_12, %c0_13], %16 {strides = array<i32>} : memref<1x4x4x256xf32, #tpu.memory_space<vmem>>, vector<1x1x4x256xf32>,
    %17 = vector.extract_strided_slice %4 {offsets = [0, 768], sizes = [4, 256], strides = [1, 1]} : vector<4x1024xf32> to vector<4x256xf32>
    %c0_14 = arith.constant 0 : index
    %c3 = arith.constant 3 : index
    %c0_15 = arith.constant 0 : index
    %c0_16 = arith.constant 0 : index
    %18 = vector.load %arg3[%c0_14, %c3, %c0_15, %c0_16] : memref<1x4x4x256xf32, #tpu.memory_space<vmem>>, vector<1x1x4x256xf32>
    %19 = vector.shape_cast %18 : vector<1x1x4x256xf32> to vector<4x256xf32>
    %20 = vector.shape_cast %17 : vector<4x256xf32> to vector<1x1x4x256xf32>
    tpu.vector_store %arg3[%c0_14, %c3, %c0_15, %c0_16], %20 {strides = array<i32>} : memref<1x4x4x256xf32, #tpu.memory_space<vmem>>, vector<1x1x4x256xf32>,
    return
  }
  func.func @transform_0(%arg0: i32) -> (i32, i32, i32) {
    %c0_i32 = arith.constant 0 : i32
    %c0_i32_0 = arith.constant 0 : i32
    %c0_i32_1 = arith.constant 0 : i32
    return %arg0, %c0_i32, %c0_i32_0 : i32, i32, i32
  }
  func.func @transform_1(%arg0: i32) -> (i32, i32) {
    %c0_i32 = arith.constant 0 : i32
    %c0_i32_0 = arith.constant 0 : i32
    %c0_i32_1 = arith.constant 0 : i32
    return %c0_i32, %c0_i32_0 : i32, i32
  }
  func.func @transform_2(%arg0: i32) -> (i32, i32, i32, i32) {
    %c0_i32 = arith.constant 0 : i32
    %c0_i32_0 = arith.constant 0 : i32
    %c0_i32_1 = arith.constant 0 : i32
    %c0_i32_2 = arith.constant 0 : i32
    return %arg0, %c0_i32, %c0_i32_0, %c0_i32_1 : i32, i32, i32, i32
  }
}

</mosaic_0001>

<bundles_post_ra>
// kernel: fad_head_forward.1
= control target key start
LH: loop header
LB: loop body
LE: loop exit
PB: predicated region body
PF: predicated region fallthrough
CT: control target
= control target key end

     0   :  { %s1336_s9 = smov 0   ;;  %s1763_s0 = inlined_call_operand.vmem [shape: f32[2,4,256], index: 0, kind: input, shape index: {}]   ;;  %s1764_s1 = inlined_call_operand.vmem [shape: bf16[256,1024], index: 1, kind: input, shape index: {}]   ;;  %s1765_s2 = inlined_call_operand.vmem [shape: f32[2,4,4,256], index: 2, kind: output, shape index: {}]  }
   0x1 LB: > { %s1160_s10 = sadd.s32 4294967295, %s1319_s9   ;;  %p1164_p0 = scmp.ge.s32.totalorder %s1319_s9, 1  ;;  %s1319_s9 = sphi %s1336_s9, %s12_s9  }
   0x2   : > { %p112_p1 = scmp.lt.s32.totalorder %s1319_s9, 3 }
   0x4   : > { %p113_p2 = pnand %p1164_p0, %p112_p1 }
   0x5   : > { %p134_p3 = scmp.lt.s32.totalorder (!%p113_p2), %s1160_s10, 1 }
   0x6   : > { %116 = sbr.rel (%p113_p2) target bundleno = 342 (0x156), region = 28 }
   0xb   : > { %v200_v0 = vld [vmem:[%s1764_s1 + $0x1c0] sm:$0xff]  ;;  %v201_v2 = vld [vmem:[%s1764_s1 + $0x1c8] sm:$0xff]  ;;  %s1767_s10 = smov (!%p134_p3, %s1160_s10), 1 }
   0xc   : > { %v204_v1 = vld [vmem:[%s1764_s1 + $0x1e0] sm:$0xff]  ;;  %v205_v4 = vld [vmem:[%s1764_s1 + $0x1e8] sm:$0xff]  ;;  %s1302_s5 = sshll.u32 %s1767_s10, 3  ;;  %s1303_s11 = sshll.u32 %s1767_s10, 5 }
   0xd   : > { %v1226_v3 = vcombine.high %v200_v0, %v204_v1  ;;  %v1225_v5 = vcombine.low %v200_v0, %v204_v1  ;;  %v192_v6 = vld [vmem:[%s1764_s1 + $0x180] sm:$0xff]  ;;  %v1228_v8 = vcombine.high %v201_v2, %v205_v4  ;;  %v1227_v9 = vcombine.low %v201_v2, %v205_v4  ;;  %v193_v11 = vld [vmem:[%s1764_s1 + $0x188] sm:$0xff]  ;;  %s138_s14 = scalar_lea.vmem %s1763_s0, %s1302_s5 }
   0xe   : > { %v196_v7 = vld [vmem:[%s1764_s1 + $0x1a0] sm:$0xff]  ;;  %v197_v12 = vld [vmem:[%s1764_s1 + $0x1a8] sm:$0xff] }
   0xf   : > { %v1218_v10 = vcombine.high %v192_v6, %v196_v7  ;;  %v184_v13 = vld [vmem:[%s1764_s1 + $0x140] sm:$0xff]  ;;  %918 = vmatprep.subr.bf16.mxu0 %v1226_v3  ;;  %v1220_v14 = vcombine.high %v193_v11, %v197_v12  ;;  %v185_v16 = vld [vmem:[%s1764_s1 + $0x148] sm:$0xff]  ;;  %959 = vmatprep.subr.bf16.mxu1 %v1228_v8  ;;  %v1217_v18 = vcombine.low %v192_v6, %v196_v7 }
  0x10   : > { %v188_v15 = vld [vmem:[%s1764_s1 + $0x160] sm:$0xff]  ;;  %v189_v17 = vld [vmem:[%s1764_s1 + $0x168] sm:$0xff]  ;;  %919 = vmatpush1.bf16.msra.mxu0 %v1225_v5  ;;  %960 = vmatpush1.bf16.msra.mxu1 %v1227_v9  ;;  %v1219_v19 = vcombine.low %v193_v11, %v197_v12 }
  0x11   : > { %920 = vmatprep.subr.bf16.mxu0 %v1218_v10  ;;  %v1210_v20 = vcombine.high %v184_v13, %v188_v15  ;;  %961 = vmatprep.subr.bf16.mxu1 %v1220_v14  ;;  %v1212_v21 = vcombine.high %v185_v16, %v189_v17  ;;  %v176_v22 = vld [vmem:[%s1764_s1 + $0x100] sm:$0xff]  ;;  %v177_v24 = vld [vmem:[%s1764_s1 + $0x108] sm:$0xff]  ;;  %v1209_v26 = vcombine.low %v184_v13, %v188_v15 }
  0x12   : > { %v180_v23 = vld [vmem:[%s1764_s1 + $0x120] sm:$0xff]  ;;  %v181_v25 = vld [vmem:[%s1764_s1 + $0x128] sm:$0xff]  ;;  %v1211_v27 = vcombine.low %v185_v16, %v189_v17 }
  0x13   : > { %v1202_v28 = vcombine.high %v176_v22, %v180_v23  ;;  %v1204_v29 = vcombine.high %v177_v24, %v181_v25  ;;  %v168_v30 = vld [vmem:[%s1764_s1 + $0xc0] sm:$0xff]  ;;  %v169_v32 = vld [vmem:[%s1764_s1 + $0xc8] sm:$0xff]  ;;  %v1201_v34 = vcombine.low %v176_v22, %v180_v23  ;;  %v1203_v35 = vcombine.low %v177_v24, %v181_v25 }
  0x14   : > { %921 = vmatpush1.bf16.msra.mxu0 %v1217_v18  ;;  %962 = vmatpush1.bf16.msra.mxu1 %v1219_v19  ;;  %v172_v31 = vld [vmem:[%s1764_s1 + $0xe0] sm:$0xff]  ;;  %v173_v33 = vld [vmem:[%s1764_s1 + $0xe8] sm:$0xff] }
  0x15   : > { %922 = vmatprep.subr.bf16.mxu0 %v1210_v20  ;;  %963 = vmatprep.subr.bf16.mxu1 %v1212_v21  ;;  %v1194_v36 = vcombine.high %v168_v30, %v172_v31  ;;  %v1196_v37 = vcombine.high %v169_v32, %v173_v33  ;;  %v160_v38 = vld [vmem:[%s1764_s1 + $0x80] sm:$0xff]  ;;  %v161_v40 = vld [vmem:[%s1764_s1 + $0x88] sm:$0xff]  ;;  %v1193_v42 = vcombine.low %v168_v30, %v172_v31 }
  0x16   : > { %v164_v39 = vld [vmem:[%s1764_s1 + $0xa0] sm:$0xff]  ;;  %v165_v41 = vld [vmem:[%s1764_s1 + $0xa8] sm:$0xff]  ;;  %v1195_v43 = vcombine.low %v169_v32, %v173_v33 }
  0x17   : > { %v1186_v44 = vcombine.high %v160_v38, %v164_v39  ;;  %v1188_v45 = vcombine.high %v161_v40, %v165_v41  ;;  %v152_v46 = vld [vmem:[%s1764_s1 + $0x40] sm:$0xff]  ;;  %v153_v48 = vld [vmem:[%s1764_s1 + $0x48] sm:$0xff]  ;;  %v1185_v50 = vcombine.low %v160_v38, %v164_v39  ;;  %v1187_v51 = vcombine.low %v161_v40, %v165_v41 }
  0x18   : > { %923 = vmatpush1.bf16.msra.mxu0 %v1209_v26  ;;  %964 = vmatpush1.bf16.msra.mxu1 %v1211_v27  ;;  %v156_v47 = vld [vmem:[%s1764_s1 + $0x60] sm:$0xff]  ;;  %v157_v49 = vld [vmem:[%s1764_s1 + $0x68] sm:$0xff] }
  0x19   : > { %924 = vmatprep.subr.bf16.mxu0 %v1202_v28  ;;  %965 = vmatprep.subr.bf16.mxu1 %v1204_v29  ;;  %v1178_v52 = vcombine.high %v152_v46, %v156_v47  ;;  %v1438_v53 = vld [vmem:[%s138_s14] sm:$0xff]  ;;  %v1180_v54 = vcombine.high %v153_v48, %v157_v49  ;;  %v145_v58 = vld [vmem:[%s1764_s1 + $0x8] sm:$0xff]  ;;  %v1177_v60 = vcombine.low %v152_v46, %v156_v47  ;;  %s143_s14 = scalar_lea.vmem %s1765_s2, %s1303_s11 }
  0x1a   : > { %v144_v55 = vld [vmem:[%s1764_s1] sm:$0xff]  ;;  %v274_v57 = vcombine.high %v1438_v53, %v1438_v53  ;;  %v149_v59 = vld [vmem:[%s1764_s1 + $0x28] sm:$0xff]  ;;  %v1179_v62 = vcombine.low %v153_v48, %v157_v49 }
  0x1b   : > { %v148_v56 = vld [vmem:[%s1764_s1 + $0x20] sm:$0xff]  ;;  %v1172_v0 = vcombine.high %v145_v58, %v149_v59  ;;  %v265_v3 = vld [vmem:[%s1764_s1 + $0x3c8] sm:$0xff]  ;;  %v1171_v6 = vcombine.low %v145_v58, %v149_v59 }
  0x1c   : > { %925 = vmatpush1.bf16.msra.mxu0 %v1201_v34  ;;  %966 = vmatpush1.bf16.msra.mxu1 %v1203_v35  ;;  %v1454_v61 = vpack.c.bf16 %v274_v57, %v274_v57  ;;  %v1170_v63 = vcombine.high %v144_v55, %v148_v56  ;;  %v264_v1 = vld [vmem:[%s1764_s1 + $0x3c0] sm:$0xff]  ;;  %v269_v4 = vld [vmem:[%s1764_s1 + $0x3e8] sm:$0xff]  ;;  %v1169_v5 = vcombine.low %v144_v55, %v148_v56 }
  0x1d   : > { %926 = vmatprep.subr.bf16.mxu0 %v1194_v36  ;;  %967 = vmatprep.subr.bf16.mxu1 %v1196_v37  ;;  %v268_v2 = vld [vmem:[%s1764_s1 + $0x3e0] sm:$0xff]  ;;  %v1292_v8 = vcombine.high %v265_v3, %v269_v4  ;;  %v257_v11 = vld [vmem:[%s1764_s1 + $0x388] sm:$0xff]  ;;  %v1291_v14 = vcombine.low %v265_v3, %v269_v4  ;;  %v202_v3 = vld [vmem:[%s1764_s1 + $0x1d0] sm:$0xff] }
  0x1e   : > { %950 = vmatprep.mubr.bf16.mxu0 %v1454_v61  ;;  %991 = vmatprep.mubr.bf16.mxu1 %v1454_v61  ;;  %v1290_v7 = vcombine.high %v264_v1, %v268_v2  ;;  %v256_v9 = vld [vmem:[%s1764_s1 + $0x380] sm:$0xff]  ;;  %v261_v12 = vld [vmem:[%s1764_s1 + $0x3a8] sm:$0xff]  ;;  %v1289_v13 = vcombine.low %v264_v1, %v268_v2  ;;  %v206_v4 = vld [vmem:[%s1764_s1 + $0x1f0] sm:$0xff] }
  0x1f   : > { %v260_v10 = vld [vmem:[%s1764_s1 + $0x3a0] sm:$0xff]  ;;  %v1284_v16 = vcombine.high %v257_v11, %v261_v12  ;;  %v249_v19 = vld [vmem:[%s1764_s1 + $0x348] sm:$0xff]  ;;  %v1283_v22 = vcombine.low %v257_v11, %v261_v12  ;;  %v194_v11 = vld [vmem:[%s1764_s1 + $0x190] sm:$0xff] }
  0x20   : > { %927 = vmatpush1.bf16.msra.mxu0 %v1193_v42  ;;  %968 = vmatpush1.bf16.msra.mxu1 %v1195_v43  ;;  %v1282_v15 = vcombine.high %v256_v9, %v260_v10  ;;  %v248_v17 = vld [vmem:[%s1764_s1 + $0x340] sm:$0xff]  ;;  %v253_v20 = vld [vmem:[%s1764_s1 + $0x368] sm:$0xff]  ;;  %v1281_v21 = vcombine.low %v256_v9, %v260_v10  ;;  %v1230_v9 = vcombine.high %v202_v3, %v206_v4  ;;  %v198_v12 = vld [vmem:[%s1764_s1 + $0x1b0] sm:$0xff] }
  0x21   : > { %928 = vmatprep.subr.bf16.mxu0 %v1186_v44  ;;  %969 = vmatprep.subr.bf16.mxu1 %v1188_v45  ;;  %v252_v18 = vld [vmem:[%s1764_s1 + $0x360] sm:$0xff]  ;;  %v1276_v24 = vcombine.high %v249_v19, %v253_v20  ;;  %v241_v27 = vld [vmem:[%s1764_s1 + $0x308] sm:$0xff]  ;;  %v1275_v30 = vcombine.low %v249_v19, %v253_v20  ;;  %v190_v20 = vld [vmem:[%s1764_s1 + $0x170] sm:$0xff] }
  0x22   : > { %v1274_v23 = vcombine.high %v248_v17, %v252_v18  ;;  %v240_v25 = vld [vmem:[%s1764_s1 + $0x300] sm:$0xff]  ;;  %v245_v28 = vld [vmem:[%s1764_s1 + $0x328] sm:$0xff]  ;;  %v1273_v29 = vcombine.low %v248_v17, %v252_v18  ;;  %v1222_v18 = vcombine.high %v194_v11, %v198_v12 }
  0x23   : > { %v244_v26 = vld [vmem:[%s1764_s1 + $0x320] sm:$0xff]  ;;  %v1268_v32 = vcombine.high %v241_v27, %v245_v28  ;;  %v233_v35 = vld [vmem:[%s1764_s1 + $0x2c8] sm:$0xff]  ;;  %v1267_v38 = vcombine.low %v241_v27, %v245_v28  ;;  %v178_v27 = vld [vmem:[%s1764_s1 + $0x110] sm:$0xff] }
  0x24   : > { %929 = vmatpush1.bf16.msra.mxu0 %v1185_v50  ;;  %970 = vmatpush1.bf16.msra.mxu1 %v1187_v51  ;;  %v1266_v31 = vcombine.high %v240_v25, %v244_v26  ;;  %v232_v33 = vld [vmem:[%s1764_s1 + $0x2c0] sm:$0xff]  ;;  %v237_v36 = vld [vmem:[%s1764_s1 + $0x2e8] sm:$0xff]  ;;  %v1265_v37 = vcombine.low %v240_v25, %v244_v26  ;;  %v182_v28 = vld [vmem:[%s1764_s1 + $0x130] sm:$0xff] }
  0x25   : > { %930 = vmatprep.subr.bf16.mxu0 %v1178_v52  ;;  %971 = vmatprep.subr.bf16.mxu1 %v1180_v54  ;;  %v236_v34 = vld [vmem:[%s1764_s1 + $0x2e0] sm:$0xff]  ;;  %v1260_v40 = vcombine.high %v233_v35, %v237_v36  ;;  %v225_v43 = vld [vmem:[%s1764_s1 + $0x288] sm:$0xff]  ;;  %v1259_v46 = vcombine.low %v233_v35, %v237_v36  ;;  %v170_v35 = vld [vmem:[%s1764_s1 + $0xd0] sm:$0xff] }
  0x26   : > { %v1258_v39 = vcombine.high %v232_v33, %v236_v34  ;;  %v224_v41 = vld [vmem:[%s1764_s1 + $0x280] sm:$0xff]  ;;  %v229_v44 = vld [vmem:[%s1764_s1 + $0x2a8] sm:$0xff]  ;;  %v1257_v45 = vcombine.low %v232_v33, %v236_v34  ;;  %v1206_v33 = vcombine.high %v178_v27, %v182_v28  ;;  %v174_v36 = vld [vmem:[%s1764_s1 + $0xf0] sm:$0xff] }
  0x27   : > { %v228_v42 = vld [vmem:[%s1764_s1 + $0x2a0] sm:$0xff]  ;;  %v1252_v48 = vcombine.high %v225_v43, %v229_v44  ;;  %v217_v51 = vld [vmem:[%s1764_s1 + $0x248] sm:$0xff]  ;;  %v1251_v55 = vcombine.low %v225_v43, %v229_v44  ;;  %v166_v43 = vld [vmem:[%s1764_s1 + $0xb0] sm:$0xff] }
  0x28   : > { %931 = vmatpush1.bf16.msra.mxu0 %v1177_v60  ;;  %972 = vmatpush1.bf16.msra.mxu1 %v1179_v62  ;;  %v1250_v47 = vcombine.high %v224_v41, %v228_v42  ;;  %v216_v49 = vld [vmem:[%s1764_s1 + $0x240] sm:$0xff]  ;;  %v221_v52 = vld [vmem:[%s1764_s1 + $0x268] sm:$0xff]  ;;  %v1249_v54 = vcombine.low %v224_v41, %v228_v42  ;;  %v162_v42 = vld [vmem:[%s1764_s1 + $0x90] sm:$0xff] }
  0x29   : > { %932 = vmatprep.subr.bf16.mxu0 %v1170_v63  ;;  %973 = vmatprep.subr.bf16.mxu1 %v1172_v0  ;;  %v220_v50 = vld [vmem:[%s1764_s1 + $0x260] sm:$0xff]  ;;  %v1244_v57 = vcombine.high %v217_v51, %v221_v52  ;;  %v209_v60 = vld [vmem:[%s1764_s1 + $0x208] sm:$0xff]  ;;  %v1243_v0 = vcombine.low %v217_v51, %v221_v52  ;;  %v163_v44 = vld [vmem:[%s1764_s1 + $0x98] sm:$0xff] }
  0x2a   : > { %v1242_v56 = vcombine.high %v216_v49, %v220_v50  ;;  %v208_v58 = vld [vmem:[%s1764_s1 + $0x200] sm:$0xff]  ;;  %v213_v62 = vld [vmem:[%s1764_s1 + $0x228] sm:$0xff]  ;;  %v1241_v63 = vcombine.low %v216_v49, %v220_v50  ;;  %v154_v50 = vld [vmem:[%s1764_s1 + $0x50] sm:$0xff] }
  0x2b   : > { %v212_v59 = vld [vmem:[%s1764_s1 + $0x220] sm:$0xff]  ;;  %v1236_v2 = vcombine.high %v209_v60, %v213_v62  ;;  %v158_v51 = vld [vmem:[%s1764_s1 + $0x70] sm:$0xff]  ;;  %v155_v52 = vld [vmem:[%s1764_s1 + $0x58] sm:$0xff] }
  0x2c   : > { %933 = vmatpush1.bf16.msra.mxu0 %v1169_v5  ;;  %974 = vmatpush1.bf16.msra.mxu1 %v1171_v6  ;;  %v1234_v1 = vcombine.high %v208_v58, %v212_v59  ;;  %v203_v5 = vld [vmem:[%s1764_s1 + $0x1d8] sm:$0xff] }
  0x2d   : > { %934 = vmatprep.subr.bf16.mxu0 %v1290_v7  ;;  %975 = vmatprep.subr.bf16.mxu1 %v1292_v8  ;;  %v207_v6 = vld [vmem:[%s1764_s1 + $0x1f8] sm:$0xff]  ;;  %v1233_v7 = vcombine.low %v208_v58, %v212_v59  ;;  %v1235_v8 = vcombine.low %v209_v60, %v213_v62  ;;  %v146_v59 = vld [vmem:[%s1764_s1 + $0x10] sm:$0xff] }
  0x2e   : > { %v1232_v10 = vcombine.high %v203_v5, %v207_v6  ;;  %v1231_v17 = vcombine.low %v203_v5, %v207_v6  ;;  %v150_v60 = vld [vmem:[%s1764_s1 + $0x30] sm:$0xff]  ;;  %v147_v62 = vld [vmem:[%s1764_s1 + $0x18] sm:$0xff] }
  0x2f   : > { %v270_v5 = vld [vmem:[%s1764_s1 + $0x3f0] sm:$0xff]  ;;  %v267_v6 = vld [vmem:[%s1764_s1 + $0x3d8] sm:$0xff] }
  0x30   : > { %935 = vmatpush2.bf16.msra.mxu0 %v1289_v13  ;;  %976 = vmatpush2.bf16.msra.mxu1 %v1291_v14  ;;  %v1574_v13 = vpack.c.bf16 %v1438_v53, %v1438_v53  ;;  %v195_v14 = vld [vmem:[%s1764_s1 + $0x198] sm:$0xff]  ;;  %v186_v53 = vld [vmem:[%s1764_s1 + $0x150] sm:$0xff] }
  0x31   : > { %936 = vmatprep.subr.bf16.mxu0 %v1282_v15  ;;  %977 = vmatprep.subr.bf16.mxu1 %v1284_v16  ;;  %v199_v15 = vld [vmem:[%s1764_s1 + $0x1b8] sm:$0xff]  ;;  %v1229_v16 = vcombine.low %v202_v3, %v206_v4  ;;  %v1214_v25 = vcombine.high %v186_v53, %v190_v20  ;;  %v266_v4 = vld [vmem:[%s1764_s1 + $0x3d0] sm:$0xff] }
  0x32   : > { %v1224_v19 = vcombine.high %v195_v14, %v199_v15 }
  0x34   : > { %937 = vmatpush2.bf16.msra.mxu0 %v1281_v21  ;;  %978 = vmatpush2.bf16.msra.mxu1 %v1283_v22  ;;  %v187_v21 = vld [vmem:[%s1764_s1 + $0x158] sm:$0xff] }
  0x35   : > { %938 = vmatprep.subr.bf16.mxu0 %v1274_v23  ;;  %979 = vmatprep.subr.bf16.mxu1 %v1276_v24  ;;  %v191_v22 = vld [vmem:[%s1764_s1 + $0x178] sm:$0xff]  ;;  %v1221_v23 = vcombine.low %v194_v11, %v198_v12  ;;  %v1223_v24 = vcombine.low %v195_v14, %v199_v15  ;;  %v258_v12 = vld [vmem:[%s1764_s1 + $0x390] sm:$0xff] }
  0x36   : > { %v1216_v26 = vcombine.high %v187_v21, %v191_v22  ;;  %v262_v14 = vld [vmem:[%s1764_s1 + $0x3b0] sm:$0xff]  ;;  %v259_v15 = vld [vmem:[%s1764_s1 + $0x398] sm:$0xff] }
  0x38   : > { %939 = vmatpush2.bf16.msra.mxu0 %v1273_v29  ;;  %980 = vmatpush2.bf16.msra.mxu1 %v1275_v30  ;;  %v179_v29 = vld [vmem:[%s1764_s1 + $0x118] sm:$0xff] }
  0x39   : > { %940 = vmatprep.subr.bf16.mxu0 %v1266_v31  ;;  %981 = vmatprep.subr.bf16.mxu1 %v1268_v32  ;;  %v183_v30 = vld [vmem:[%s1764_s1 + $0x138] sm:$0xff]  ;;  %v1213_v31 = vcombine.low %v186_v53, %v190_v20  ;;  %v1215_v32 = vcombine.low %v187_v21, %v191_v22  ;;  %v250_v20 = vld [vmem:[%s1764_s1 + $0x350] sm:$0xff] }
  0x3a   : > { %v1208_v34 = vcombine.high %v179_v29, %v183_v30  ;;  %v254_v21 = vld [vmem:[%s1764_s1 + $0x370] sm:$0xff]  ;;  %v251_v22 = vld [vmem:[%s1764_s1 + $0x358] sm:$0xff] }
  0x3c   : > { %941 = vmatpush2.bf16.msra.mxu0 %v1265_v37  ;;  %982 = vmatpush2.bf16.msra.mxu1 %v1267_v38  ;;  %v175_v37 = vld [vmem:[%s1764_s1 + $0xf8] sm:$0xff]  ;;  %v1205_v38 = vcombine.low %v178_v27, %v182_v28  ;;  %v242_v28 = vld [vmem:[%s1764_s1 + $0x310] sm:$0xff] }
  0x3d   : > { %942 = vmatprep.subr.bf16.mxu0 %v1258_v39  ;;  %983 = vmatprep.subr.bf16.mxu1 %v1260_v40  ;;  %v1207_v39 = vcombine.low %v179_v29, %v183_v30  ;;  %v1198_v40 = vcombine.high %v170_v35, %v174_v36  ;;  %v246_v29 = vld [vmem:[%s1764_s1 + $0x330] sm:$0xff]  ;;  %v243_v30 = vld [vmem:[%s1764_s1 + $0x318] sm:$0xff] }
  0x40   : > { %943 = vmatpush2.bf16.msra.mxu0 %v1257_v45  ;;  %984 = vmatpush2.bf16.msra.mxu1 %v1259_v46  ;;  %v167_v45 = vld [vmem:[%s1764_s1 + $0xb8] sm:$0xff]  ;;  %v1197_v46 = vcombine.low %v170_v35, %v174_v36  ;;  %v234_v36 = vld [vmem:[%s1764_s1 + $0x2d0] sm:$0xff] }
  0x41   : > { %944 = vmatprep.subr.bf16.mxu0 %v1250_v47  ;;  %985 = vmatprep.subr.bf16.mxu1 %v1252_v48  ;;  %v1190_v48 = vcombine.high %v162_v42, %v166_v43  ;;  %v1192_v49 = vcombine.high %v163_v44, %v167_v45 }
  0x44   : > { %945 = vmatpush2.bf16.msra.mxu0 %v1249_v54  ;;  %986 = vmatpush2.bf16.msra.mxu1 %v1251_v55  ;;  %v159_v54 = vld [vmem:[%s1764_s1 + $0x78] sm:$0xff]  ;;  %v1189_v55 = vcombine.low %v162_v42, %v166_v43  ;;  %v226_v43 = vld [vmem:[%s1764_s1 + $0x290] sm:$0xff] }
  0x45   : > { %946 = vmatprep.subr.bf16.mxu0 %v1242_v56  ;;  %987 = vmatprep.subr.bf16.mxu1 %v1244_v57  ;;  %v1191_v56 = vcombine.low %v163_v44, %v167_v45  ;;  %v1182_v57 = vcombine.high %v154_v50, %v158_v51  ;;  %v1184_v58 = vcombine.high %v155_v52, %v159_v54  ;;  %v230_v44 = vld [vmem:[%s1764_s1 + $0x2b0] sm:$0xff]  ;;  %v227_v45 = vld [vmem:[%s1764_s1 + $0x298] sm:$0xff] }
  0x48   : > { %947 = vmatpush2.bf16.msra.mxu0 %v1241_v63  ;;  %988 = vmatpush2.bf16.msra.mxu1 %v1243_v0  ;;  %v151_v63 = vld [vmem:[%s1764_s1 + $0x38] sm:$0xff]  ;;  %v1181_v0 = vcombine.low %v154_v50, %v158_v51  ;;  %v218_v51 = vld [vmem:[%s1764_s1 + $0x250] sm:$0xff] }
  0x49   : > { %948 = vmatprep.subr.bf16.mxu0 %v1234_v1  ;;  %989 = vmatprep.subr.bf16.mxu1 %v1236_v2  ;;  %v1183_v1 = vcombine.low %v155_v52, %v159_v54  ;;  %v1174_v2 = vcombine.high %v146_v59, %v150_v60  ;;  %v1176_v3 = vcombine.high %v147_v62, %v151_v63  ;;  %v222_v52 = vld [vmem:[%s1764_s1 + $0x270] sm:$0xff]  ;;  %v219_v54 = vld [vmem:[%s1764_s1 + $0x258] sm:$0xff] }
  0x4c   : > { %949 = vmatpush2.bf16.msra.mxu0 %v1233_v7  ;;  %990 = vmatpush2.bf16.msra.mxu1 %v1235_v8  ;;  %v271_v7 = vld [vmem:[%s1764_s1 + $0x3f8] sm:$0xff]  ;;  %v1173_v8 = vcombine.low %v146_v59, %v150_v60  ;;  %v210_v60 = vld [vmem:[%s1764_s1 + $0x210] sm:$0xff] }
  0x4d   : > { %1000 = vmatprep.subr.bf16.mxu0 %v1230_v9  ;;  %1041 = vmatprep.subr.bf16.mxu1 %v1232_v10  ;;  %v1175_v9 = vcombine.low %v147_v62, %v151_v63  ;;  %v1294_v10 = vcombine.high %v266_v4, %v270_v5  ;;  %v1296_v11 = vcombine.high %v267_v6, %v271_v7  ;;  %v214_v62 = vld [vmem:[%s1764_s1 + $0x230] sm:$0xff]  ;;  %v211_v63 = vld [vmem:[%s1764_s1 + $0x218] sm:$0xff] }
  0x4f   : > { %951 = vmatmul.mubr.bf16.vlgmr.msra.gmra.mxu0 %v1574_v13  ;;  %992 = vmatmul.mubr.bf16.vlgmr.msra.gmra.mxu1 %v1574_v13 }
  0x50   : > { %1001 = vmatpush1.bf16.msra.mxu0 %v1229_v16  ;;  %1042 = vmatpush1.bf16.msra.mxu1 %v1231_v17  ;;  %v263_v16 = vld [vmem:[%s1764_s1 + $0x3b8] sm:$0xff]  ;;  %v1293_v17 = vcombine.low %v266_v4, %v270_v5  ;;  %v1237_v5 = vcombine.low %v210_v60, %v214_v62 }
  0x51   : > { %1002 = vmatprep.subr.bf16.mxu0 %v1222_v18  ;;  %1043 = vmatprep.subr.bf16.mxu1 %v1224_v19  ;;  %v1295_v18 = vcombine.low %v267_v6, %v271_v7  ;;  %v1286_v19 = vcombine.high %v258_v12, %v262_v14  ;;  %v1288_v53 = vcombine.high %v259_v15, %v263_v16 }
  0x52   : > { %1032 = vmatprep.mubr.bf16.mxu0 %v1454_v61  ;;  %1073 = vmatprep.mubr.bf16.mxu1 %v1454_v61  ;;  %v171_v61 = vld [vmem:[%s1764_s1 + $0xd8] sm:$0xff] }
  0x53   : > { %v1200_v41 = vcombine.high %v171_v61, %v175_v37  ;;  %v1199_v47 = vcombine.low %v171_v61, %v175_v37  ;;  %v238_v61 = vld [vmem:[%s1764_s1 + $0x2f0] sm:$0xff]  ;;  %v235_v37 = vld [vmem:[%s1764_s1 + $0x2d8] sm:$0xff] }
  0x54   : > { %1003 = vmatpush1.bf16.msra.mxu0 %v1221_v23  ;;  %1044 = vmatpush1.bf16.msra.mxu1 %v1223_v24  ;;  %v255_v23 = vld [vmem:[%s1764_s1 + $0x378] sm:$0xff]  ;;  %v1285_v24 = vcombine.low %v258_v12, %v262_v14 }
  0x55   : > { %1004 = vmatprep.subr.bf16.mxu0 %v1214_v25  ;;  %1045 = vmatprep.subr.bf16.mxu1 %v1216_v26  ;;  %v1287_v25 = vcombine.low %v259_v15, %v263_v16  ;;  %v1278_v26 = vcombine.high %v250_v20, %v254_v21  ;;  %v1280_v27 = vcombine.high %v251_v22, %v255_v23 }
  0x58   : > { %1005 = vmatpush1.bf16.msra.mxu0 %v1213_v31  ;;  %1046 = vmatpush1.bf16.msra.mxu1 %v1215_v32  ;;  %v247_v31 = vld [vmem:[%s1764_s1 + $0x338] sm:$0xff]  ;;  %v1277_v32 = vcombine.low %v250_v20, %v254_v21 }
  0x59   : > { %1006 = vmatprep.subr.bf16.mxu0 %v1206_v33  ;;  %1047 = vmatprep.subr.bf16.mxu1 %v1208_v34  ;;  %v1279_v33 = vcombine.low %v251_v22, %v255_v23  ;;  %v1270_v34 = vcombine.high %v242_v28, %v246_v29  ;;  %v1272_v35 = vcombine.high %v243_v30, %v247_v31 }
  0x5c   : > { %1007 = vmatpush1.bf16.msra.mxu0 %v1205_v38  ;;  %1048 = vmatpush1.bf16.msra.mxu1 %v1207_v39  ;;  %v239_v38 = vld [vmem:[%s1764_s1 + $0x2f8] sm:$0xff]  ;;  %v1269_v39 = vcombine.low %v242_v28, %v246_v29 }
  0x5d   : > { %1008 = vmatprep.subr.bf16.mxu0 %v1198_v40  ;;  %1049 = vmatprep.subr.bf16.mxu1 %v1200_v41  ;;  %v1271_v40 = vcombine.low %v243_v30, %v247_v31  ;;  %v1262_v41 = vcombine.high %v234_v36, %v238_v61  ;;  %v1264_v42 = vcombine.high %v235_v37, %v239_v38 }
  0x60   : > { %1009 = vmatpush1.bf16.msra.mxu0 %v1197_v46  ;;  %1050 = vmatpush1.bf16.msra.mxu1 %v1199_v47  ;;  %v231_v46 = vld [vmem:[%s1764_s1 + $0x2b8] sm:$0xff]  ;;  %v1261_v47 = vcombine.low %v234_v36, %v238_v61 }
  0x61   : > { %1010 = vmatprep.subr.bf16.mxu0 %v1190_v48  ;;  %1051 = vmatprep.subr.bf16.mxu1 %v1192_v49  ;;  %v1263_v48 = vcombine.low %v235_v37, %v239_v38  ;;  %v1254_v49 = vcombine.high %v226_v43, %v230_v44  ;;  %v1256_v50 = vcombine.high %v227_v45, %v231_v46 }
  0x64   : > { %1011 = vmatpush1.bf16.msra.mxu0 %v1189_v55  ;;  %1052 = vmatpush1.bf16.msra.mxu1 %v1191_v56  ;;  %v223_v55 = vld [vmem:[%s1764_s1 + $0x278] sm:$0xff]  ;;  %v1253_v56 = vcombine.low %v226_v43, %v230_v44 }
  0x65   : > { %1012 = vmatprep.subr.bf16.mxu0 %v1182_v57  ;;  %1053 = vmatprep.subr.bf16.mxu1 %v1184_v58  ;;  %v1255_v57 = vcombine.low %v227_v45, %v231_v46  ;;  %v1246_v58 = vcombine.high %v218_v51, %v222_v52  ;;  %v1248_v59 = vcombine.high %v219_v54, %v223_v55 }
  0x68   : > { %1013 = vmatpush1.bf16.msra.mxu0 %v1181_v0  ;;  %1054 = vmatpush1.bf16.msra.mxu1 %v1183_v1  ;;  %v215_v0 = vld [vmem:[%s1764_s1 + $0x238] sm:$0xff]  ;;  %v1245_v1 = vcombine.low %v218_v51, %v222_v52 }
  0x69   : > { %1014 = vmatprep.subr.bf16.mxu0 %v1174_v2  ;;  %1055 = vmatprep.subr.bf16.mxu1 %v1176_v3  ;;  %v1247_v2 = vcombine.low %v219_v54, %v223_v55  ;;  %v1238_v3 = vcombine.high %v210_v60, %v214_v62  ;;  %v1240_v4 = vcombine.high %v211_v63, %v215_v0 }
  0x6a   : > { %v1239_v6 = vcombine.low %v211_v63, %v215_v0 }
  0x6c   : > { %1015 = vmatpush1.bf16.msra.mxu0 %v1173_v8  ;;  %1056 = vmatpush1.bf16.msra.mxu1 %v1175_v9 }
  0x6d   : > { %1016 = vmatprep.subr.bf16.mxu0 %v1294_v10  ;;  %1057 = vmatprep.subr.bf16.mxu1 %v1296_v11 }
  0x70   : > { %1017 = vmatpush2.bf16.msra.mxu0 %v1293_v17  ;;  %1058 = vmatpush2.bf16.msra.mxu1 %v1295_v18 }
  0x71   : > { %1018 = vmatprep.subr.bf16.mxu0 %v1286_v19  ;;  %1059 = vmatprep.subr.bf16.mxu1 %v1288_v53 }
  0x74   : > { %1019 = vmatpush2.bf16.msra.mxu0 %v1285_v24  ;;  %1060 = vmatpush2.bf16.msra.mxu1 %v1287_v25 }
  0x75   : > { %1020 = vmatprep.subr.bf16.mxu0 %v1278_v26  ;;  %1061 = vmatprep.subr.bf16.mxu1 %v1280_v27 }
  0x78   : > { %1021 = vmatpush2.bf16.msra.mxu0 %v1277_v32  ;;  %1062 = vmatpush2.bf16.msra.mxu1 %v1279_v33 }
  0x79   : > { %1022 = vmatprep.subr.bf16.mxu0 %v1270_v34  ;;  %1063 = vmatprep.subr.bf16.mxu1 %v1272_v35 }
  0x7c   : > { %1023 = vmatpush2.bf16.msra.mxu0 %v1269_v39  ;;  %1064 = vmatpush2.bf16.msra.mxu1 %v1271_v40 }
  0x7d   : > { %1024 = vmatprep.subr.bf16.mxu0 %v1262_v41  ;;  %1065 = vmatprep.subr.bf16.mxu1 %v1264_v42 }
  0x80   : > { %1025 = vmatpush2.bf16.msra.mxu0 %v1261_v47  ;;  %1066 = vmatpush2.bf16.msra.mxu1 %v1263_v48 }
  0x81   : > { %1026 = vmatprep.subr.bf16.mxu0 %v1254_v49  ;;  %1067 = vmatprep.subr.bf16.mxu1 %v1256_v50 }
  0x84   : > { %1027 = vmatpush2.bf16.msra.mxu0 %v1253_v56  ;;  %1068 = vmatpush2.bf16.msra.mxu1 %v1255_v57 }
  0x85   : > { %1028 = vmatprep.subr.bf16.mxu0 %v1246_v58  ;;  %1069 = vmatprep.subr.bf16.mxu1 %v1248_v59 }
  0x88   : > { %1029 = vmatpush2.bf16.msra.mxu0 %v1245_v1  ;;  %1070 = vmatpush2.bf16.msra.mxu1 %v1247_v2 }
  0x89   : > { %1030 = vmatprep.subr.bf16.mxu0 %v1238_v3  ;;  %1071 = vmatprep.subr.bf16.mxu1 %v1240_v4 }
  0x8c   : > { %1031 = vmatpush2.bf16.msra.mxu0 %v1237_v5  ;;  %1072 = vmatpush2.bf16.msra.mxu1 %v1239_v6 }
  0x8f   : > { %1033 = vmatmul.mubr.bf16.vlgmr.msra.gmra.mxu0 %v1574_v13  ;;  %1074 = vmatmul.mubr.bf16.vlgmr.msra.gmra.mxu1 %v1574_v13 }
 0x10f   : > { %v952_v7 = vpop.f32.mrf.mxu0  ;;  %v993_v8 = vpop.f32.mrf.mxu1 }
 0x111   : > { %v954_v9 = vpop.f32.mrf.mxu0  ;;  %v995_v11 = vpop.f32.mrf.mxu1 }
 0x112   : > { %v1084_v10 = vcombine.low %v952_v7, %v954_v9  ;;  %v1089_v12 = vcombine.low %v993_v8, %v995_v11 }
 0x113   : > { %v956_v14 = vpop.f32.mrf.mxu0  ;;  %v997_v15 = vpop.f32.mrf.mxu1 }
 0x114   : > { %1086 = vst [vmem:[%s143_s14] sm:$0xff] %v1084_v10  ;;  %1297 = vst [vmem:[%s143_s14 + $0x8] sm:$0xff] %v1089_v12 }
 0x115   : > { %v957_v16 = vpop.f32.mrf.mxu0  ;;  %v998_v17 = vpop.f32.mrf.mxu1 }
 0x14f   : > { %v1034_v18 = vpop.f32.mrf.mxu0  ;;  %v1075_v19 = vpop.f32.mrf.mxu1 }
 0x151   : > { %v1036_v13 = vpop.f32.mrf.mxu0  ;;  %v1077_v20 = vpop.f32.mrf.mxu1 }
 0x152   : > { %v1095_v53 = vcombine.low %v1034_v18, %v1036_v13  ;;  %v1101_v21 = vcombine.low %v1075_v19, %v1077_v20 }
 0x153   : > { %v1038_v22 = vpop.f32.mrf.mxu0  ;;  %v1079_v23 = vpop.f32.mrf.mxu1 }
 0x154   : > { %1298 = vst [vmem:[%s143_s14 + $0x10] sm:$0xff] %v1095_v53  ;;  %1299 = vst [vmem:[%s143_s14 + $0x18] sm:$0xff] %v1101_v21 }
 0x155   : > { %v1039_v24 = vpop.f32.mrf.mxu0  ;;  %v1080_v25 = vpop.f32.mrf.mxu1 }
 0x156 PF: > { %s12_s9 = sadd.s32 1, %s1319_s9  }
 0x157   : > { %p9_p4 = scmp.ge.s32.totalorder %s12_s9, 4  }
 0x159   :  { %11 = sbr.rel (!%p9_p4) target bundleno = 1 (0x1), region = 61 }

</bundles_post_ra>
